<compile_context>
chip_gen: v7x
topology: tpu7x:2x2x1
jax: 0.10.0
libtpu: 0.0.40
codegen_flags: <defaults>
</compile_context>

<pallas_src>
import jax
import jax.numpy as jnp
from jax.experimental import pallas as pl
from jax.experimental.pallas import tpu as pltpu

EXPANSION = 4
BN_EPS = 1e-5
LANE = 128
SUBLANE = 8


def _round_up(n, m):
    return ((n + m - 1) // m) * m


# --------------------------------------------------------------------------- #
# Kernel
# --------------------------------------------------------------------------- #
def bottleneck_kernel(x_ref, w_ref, p_ref, o_ref):
    """One (TB, D) row-tile of the batched Bottleneck.

    x_ref: (TB, D)    f32   zero-padded input rows (one PyTorch call per row)
    w_ref: (3, D, D)  bf16  [w1, w2, w3], zero-padded, stored (in, out)
    p_ref: (6, D)     f32   [s1, be1, s2, be2, s3, be3], s_i = gamma_i*eps**-0.5
    o_ref: (TB, D)    f32
    """
    p = p_ref[...]

    def bn_train_b1(h, scale, beta):
        # nn.BatchNorm1d (training mode) on a (1, C) batch, applied per row:
        # mean == h and biased var == 0, so rsqrt(var + eps) is the constant
        # eps**-0.5 which is pre-folded into `scale` on the host (no EUP work).
        # (h - h) keeps the literal inf/NaN propagation of the PyTorch math.
        return (h - h) * scale + beta

    # linear1 -> bn1 -> relu  (dead linear bias omitted; cancelled by BN mean)
    h = jnp.dot(x_ref[...].astype(jnp.bfloat16), w_ref[0],
                preferred_element_type=jnp.float32)
    h = jnp.maximum(bn_train_b1(h, p[0:1, :], p[1:2, :]), 0.0)

    # linear2 -> bn2 -> relu
    h = jnp.dot(h.astype(jnp.bfloat16), w_ref[1],
                preferred_element_type=jnp.float32)
    h = jnp.maximum(bn_train_b1(h, p[2:3, :], p[3:4, :]), 0.0)

    # linear3 -> bn3
    h = jnp.dot(h.astype(jnp.bfloat16), w_ref[2],
                preferred_element_type=jnp.float32)
    h = bn_train_b1(h, p[4:5, :], p[5:6, :])

    # downsample is None -> identity = x ; residual add + final relu.
    # x is re-read here instead of being kept live across the matmul stages.
    o_ref[...] = jnp.maximum(h + x_ref[...], 0.0)


# --------------------------------------------------------------------------- #
# Host-side packing (done ONCE, not per forward call)
# --------------------------------------------------------------------------- #
def pack_bottleneck_params(params):
    """Pad + pack the module parameters into their final HBM layout/dtypes."""
    inplanes = params["w1"].shape[0]
    width = params["w1"].shape[1]
    out_dim = params["w3"].shape[1]
    D = _round_up(max(inplanes, width, out_dim), LANE)

    def pad_w(w):
        out = jnp.zeros((D, D), jnp.float32)
        return out.at[: w.shape[0], : w.shape[1]].set(w).astype(jnp.bfloat16)

    W = jnp.stack([pad_w(params["w1"]), pad_w(params["w2"]), pad_w(params["w3"])])

    inv_std = float(BN_EPS) ** -0.5   # rsqrt(0 + eps), folded at pack time

    def pad_v(v, scale=1.0):
        return jnp.zeros((D,), jnp.float32).at[: v.shape[0]].set(v * scale)

    P = jnp.stack([pad_v(params["g1"], inv_std), pad_v(params["be1"]),
                   pad_v(params["g2"], inv_std), pad_v(params["be2"]),
                   pad_v(params["g3"], inv_std), pad_v(params["be3"])])

    return W, P, (inplanes, out_dim, D)


# --------------------------------------------------------------------------- #
# Forward wrapper
# --------------------------------------------------------------------------- #
def bottleneck_forward(x, packed, *, tb=512):
    """Matches the PyTorch forward.

    x: (inplanes,)    -> returns (1, planes*4), exactly like the module.
    x: (B, inplanes)  -> returns (B, planes*4), each row == one forward call.
    """
    W, P, (inplanes, out_dim, D) = packed
    xb = x[None, :] if x.ndim == 1 else x
    B, in_dim = xb.shape
    assert in_dim == inplanes, "input feature dim must equal inplanes"
    assert out_dim == inplanes, "residual add requires inplanes == planes*4"

    # Row tiling: large TB amortizes per-grid-step overhead, but keep >= 2 grid
    # steps when the batch allows so v7x's second TensorCore gets work.
    TB = _round_up(min(tb, _round_up(B, SUBLANE)), SUBLANE)
    if _round_up(B, TB) == TB and TB > SUBLANE:
        TB = _round_up((TB + 1) // 2, SUBLANE)
    B_pad = _round_up(B, TB)

    x_pad = jnp.zeros((B_pad, D), jnp.float32).at[:B, :inplanes].set(
        xb.astype(jnp.float32))

    grid = (B_pad // TB,)

    # VMEM budget: W (bf16, single-buffered) + P + double-buffered x/out tiles.
    vmem_need = 3 * D * D * 2 + 6 * D * 4 + 2 * 2 * TB * D * 4
    vmem_limit = None
    if vmem_need > (16 << 20):            # above the smallest default (v5e)
        vmem_limit = min(int(vmem_need * 1.4) + (4 << 20), 112 << 20)

    cost = pl.CostEstimate(
        flops=2 * 3 * B_pad * D * D + 10 * B_pad * D,
        transcendentals=0,                              # rsqrt(eps) pre-folded
        bytes_accessed=4 * B_pad * D * 2 + 3 * D * D * 2 + 6 * D * 4,
    )

    out_pad = pl.pallas_call(
        bottleneck_kernel,
        out_shape=jax.ShapeDtypeStruct((B_pad, D), jnp.float32),
        grid=grid,
        in_specs=[
            pl.BlockSpec((TB, D), lambda i: (i, 0)),           # batched rows
            pl.BlockSpec((3, D, D), lambda i: (0, 0, 0),       # packed weights
                         pipeline_mode=pl.Buffered(1)),        # grid-invariant
            pl.BlockSpec((6, D), lambda i: (0, 0),             # packed BN params
                         pipeline_mode=pl.Buffered(1)),
        ],
        out_specs=pl.BlockSpec((TB, D), lambda i: (i, 0)),
        compiler_params=pltpu.CompilerParams(
            dimension_semantics=("parallel",),
            vmem_limit_bytes=vmem_limit),
        cost_estimate=cost,
    )(x_pad, W, P)

    return out_pad[:B, :out_dim]


# --------------------------------------------------------------------------- #
# Parameter construction + pure-JAX reference (literal PyTorch math)
# --------------------------------------------------------------------------- #
def make_params(key, inplanes, planes, base_width=64, groups=1):
    width = int(planes * (base_width / 64.0)) * groups
    out_dim = planes * EXPANSION
    assert width == planes, "linear1 out-features must equal bn1 width"
    ks = jax.random.split(key, 12)

    def lin(kw, kb, fan_in, fan_out):
        # weight stored transposed (in, out) so the kernel does x @ W
        w = jax.random.normal(kw, (fan_in, fan_out), jnp.float32) * 0.05
        b = jax.random.normal(kb, (fan_out,), jnp.float32) * 0.05
        return w, b

    w1, b1 = lin(ks[0], ks[1], inplanes, planes)
    w2, b2 = lin(ks[2], ks[3], width, width)
    w3, b3 = lin(ks[4], ks[5], width, out_dim)

    def bn(kg, kb, c):
        g = 1.0 + 0.1 * jax.random.normal(kg, (c,), jnp.float32)
        b = 0.1 * jax.random.normal(kb, (c,), jnp.float32)
        return g, b

    g1, be1 = bn(ks[6], ks[7], width)
    g2, be2 = bn(ks[8], ks[9], width)
    g3, be3 = bn(ks[10], ks[11], out_dim)

    return dict(w1=w1, b1=b1, g1=g1, be1=be1,
                w2=w2, b2=b2, g2=g2, be2=be2,
                w3=w3, b3=b3, g3=g3, be3=be3)


def _bn_ref(h2d, gamma, beta):
    # Literal PyTorch training-mode BatchNorm1d on a (N, C) input.
    mean = jnp.mean(h2d, axis=0, keepdims=True)
    var = jnp.mean((h2d - mean) ** 2, axis=0, keepdims=True)
    return (h2d - mean) * jax.lax.rsqrt(var + BN_EPS) * gamma + beta


def reference_forward_single(x, p):
    """Pure-JAX mirror of the PyTorch forward for a 1-D x (training-mode BN,
    INCLUDING the linear biases the kernel provably does not need)."""
    h = x @ p["w1"] + p["b1"]                       # (planes,)
    h = _bn_ref(h[None, :], p["g1"], p["be1"])      # unsqueeze(0) -> (1, width)
    h = jnp.maximum(h, 0.0)
    h = h @ p["w2"] + p["b2"]
    h = jnp.maximum(_bn_ref(h, p["g2"], p["be2"]), 0.0)
    h = h @ p["w3"] + p["b3"]
    h = _bn_ref(h, p["g3"], p["be3"])
    return jnp.maximum(h + x, 0.0)                  # (1, out_dim)


if __name__ == "__main__":
    planes = 32
    inplanes = planes * EXPANSION      # 128, required by the residual add
    B = 256                            # batched path (rows are independent calls)

    key = jax.random.PRNGKey(0)
    kx, kb_, kp = jax.random.split(key, 3)
    params = make_params(kp, inplanes, planes)
    packed = pack_bottleneck_params(params)        # pad/pack ONCE

    # 1) canonical PyTorch case: 1-D input -> (1, planes*4)
    x1 = jax.random.normal(kx, (inplanes,), jnp.float32)
    out1 = jax.block_until_ready(bottleneck_forward(x1, packed))
    ref1 = reference_forward_single(x1, params)
    assert out1.shape == (1, planes * EXPANSION)
    assert jnp.allclose(out1, ref1, atol=1e-5, rtol=1e-5), "single-sample mismatch"

    # 2) batched case: each row goes through the exact same forward math
    xB = jax.random.normal(kb_, (B, inplanes), jnp.float32)
    outB = jax.block_until_ready(bottleneck_forward(xB, packed))
    refB = jax.vmap(lambda r: reference_forward_single(r, params)[0])(xB)
    assert outB.shape == (B, planes * EXPANSION)
    assert jnp.allclose(outB, refB, atol=1e-5, rtol=1e-5), "batched mismatch"

    print("KERNEL_OK")
</pallas_src>

<mosaic_0001>
module attributes {stable_mosaic.version = 11 : i64} {
  func.func @bottleneck_kernel(%arg0: i32, %arg1: memref<8x128xf32, #tpu.memory_space<vmem>>, %arg2: memref<3x128x128xbf16, #tpu.memory_space<vmem>>, %arg3: memref<6x128xf32, #tpu.memory_space<vmem>>, %arg4: memref<8x128xf32, #tpu.memory_space<vmem>>) attributes {dimension_semantics = [#tpu.dimension_semantics<parallel>], iteration_bounds = array<i64: 1>, scalar_prefetch = 0 : i64, scratch_operands = 0 : i64, tpu.core_type = #tpu.core_type<tc>, window_params = [{transform_indices = @transform_0, window_bounds = array<i64: 8, 128>}, {pipeline_mode = #tpu.pipeline_mode<synchronous>, transform_indices = @transform_1, window_bounds = array<i64: 3, 128, 128>}, {pipeline_mode = #tpu.pipeline_mode<synchronous>, transform_indices = @transform_2, window_bounds = array<i64: 6, 128>}, {transform_indices = @transform_3, window_bounds = array<i64: 8, 128>}]} {
    %c0 = arith.constant 0 : index
    %c0_0 = arith.constant 0 : index
    %0 = vector.load %arg3[%c0, %c0_0] : memref<6x128xf32, #tpu.memory_space<vmem>>, vector<6x128xf32>
    %c0_1 = arith.constant 0 : index
    %c0_2 = arith.constant 0 : index
    %1 = vector.load %arg1[%c0_1, %c0_2] : memref<8x128xf32, #tpu.memory_space<vmem>>, vector<8x128xf32>
    %2 = arith.truncf %1 : vector<8x128xf32> to vector<8x128xbf16>
    %c0_3 = arith.constant 0 : index
    %c0_4 = arith.constant 0 : index
    %c0_5 = arith.constant 0 : index
    %3 = vector.load %arg2[%c0_3, %c0_4, %c0_5] : memref<3x128x128xbf16, #tpu.memory_space<vmem>>, vector<1x128x128xbf16>
    %4 = vector.shape_cast %3 : vector<1x128x128xbf16> to vector<128x128xbf16>
    %cst = arith.constant dense<0.000000e+00> : vector<8x128xf32>
    %5 = tpu.matmul %2, %4, %cst {dimension_numbers = #tpu.dot_dimension_numbers<[1], [0], [0], [1], [0, 0, 1, 1], [], []>} : vector<8x128xbf16>, vector<128x128xbf16>, vector<8x128xf32> -> vector<8x128xf32>
    %6 = vector.extract_strided_slice %0 {offsets = [0, 0], sizes = [1, 128], strides = [1, 1]} : vector<6x128xf32> to vector<1x128xf32>
    %7 = vector.extract_strided_slice %0 {offsets = [1, 0], sizes = [1, 128], strides = [1, 1]} : vector<6x128xf32> to vector<1x128xf32>
    %8 = arith.subf %5, %5 : vector<8x128xf32>
    %9 = vector.broadcast %6 : vector<1x128xf32> to vector<8x128xf32>
    %10 = arith.mulf %8, %9 : vector<8x128xf32>
    %11 = vector.broadcast %7 : vector<1x128xf32> to vector<8x128xf32>
    %12 = arith.addf %10, %11 : vector<8x128xf32>
    %cst_6 = arith.constant 0.000000e+00 : f32
    %13 = vector.broadcast %cst_6 : f32 to vector<8x128xf32>
    %14 = arith.maximumf %12, %13 : vector<8x128xf32>
    %15 = arith.truncf %14 : vector<8x128xf32> to vector<8x128xbf16>
    %c1 = arith.constant 1 : index
    %c0_7 = arith.constant 0 : index
    %c0_8 = arith.constant 0 : index
    %16 = vector.load %arg2[%c1, %c0_7, %c0_8] : memref<3x128x128xbf16, #tpu.memory_space<vmem>>, vector<1x128x128xbf16>
    %17 = vector.shape_cast %16 : vector<1x128x128xbf16> to vector<128x128xbf16>
    %cst_9 = arith.constant dense<0.000000e+00> : vector<8x128xf32>
    %18 = tpu.matmul %15, %17, %cst_9 {dimension_numbers = #tpu.dot_dimension_numbers<[1], [0], [0], [1], [0, 0, 1, 1], [], []>} : vector<8x128xbf16>, vector<128x128xbf16>, vector<8x128xf32> -> vector<8x128xf32>
    %19 = vector.extract_strided_slice %0 {offsets = [2, 0], sizes = [1, 128], strides = [1, 1]} : vector<6x128xf32> to vector<1x128xf32>
    %20 = vector.extract_strided_slice %0 {offsets = [3, 0], sizes = [1, 128], strides = [1, 1]} : vector<6x128xf32> to vector<1x128xf32>
    %21 = arith.subf %18, %18 : vector<8x128xf32>
    %22 = vector.broadcast %19 : vector<1x128xf32> to vector<8x128xf32>
    %23 = arith.mulf %21, %22 : vector<8x128xf32>
    %24 = vector.broadcast %20 : vector<1x128xf32> to vector<8x128xf32>
    %25 = arith.addf %23, %24 : vector<8x128xf32>
    %cst_10 = arith.constant 0.000000e+00 : f32
    %26 = vector.broadcast %cst_10 : f32 to vector<8x128xf32>
    %27 = arith.maximumf %25, %26 : vector<8x128xf32>
    %28 = arith.truncf %27 : vector<8x128xf32> to vector<8x128xbf16>
    %c2 = arith.constant 2 : index
    %c0_11 = arith.constant 0 : index
    %c0_12 = arith.constant 0 : index
    %29 = vector.load %arg2[%c2, %c0_11, %c0_12] : memref<3x128x128xbf16, #tpu.memory_space<vmem>>, vector<1x128x128xbf16>
    %30 = vector.shape_cast %29 : vector<1x128x128xbf16> to vector<128x128xbf16>
    %cst_13 = arith.constant dense<0.000000e+00> : vector<8x128xf32>
    %31 = tpu.matmul %28, %30, %cst_13 {dimension_numbers = #tpu.dot_dimension_numbers<[1], [0], [0], [1], [0, 0, 1, 1], [], []>} : vector<8x128xbf16>, vector<128x128xbf16>, vector<8x128xf32> -> vector<8x128xf32>
    %32 = vector.extract_strided_slice %0 {offsets = [4, 0], sizes = [1, 128], strides = [1, 1]} : vector<6x128xf32> to vector<1x128xf32>
    %33 = vector.extract_strided_slice %0 {offsets = [5, 0], sizes = [1, 128], strides = [1, 1]} : vector<6x128xf32> to vector<1x128xf32>
    %34 = arith.subf %31, %31 : vector<8x128xf32>
    %35 = vector.broadcast %32 : vector<1x128xf32> to vector<8x128xf32>
    %36 = arith.mulf %34, %35 : vector<8x128xf32>
    %37 = vector.broadcast %33 : vector<1x128xf32> to vector<8x128xf32>
    %38 = arith.addf %36, %37 : vector<8x128xf32>
    %c0_14 = arith.constant 0 : index
    %c0_15 = arith.constant 0 : index
    %39 = vector.load %arg1[%c0_14, %c0_15] : memref<8x128xf32, #tpu.memory_space<vmem>>, vector<8x128xf32>
    %40 = arith.addf %38, %39 : vector<8x128xf32>
    %cst_16 = arith.constant 0.000000e+00 : f32
    %41 = vector.broadcast %cst_16 : f32 to vector<8x128xf32>
    %42 = arith.maximumf %40, %41 : vector<8x128xf32>
    %c0_17 = arith.constant 0 : index
    %c0_18 = arith.constant 0 : index
    %43 = vector.load %arg4[%c0_17, %c0_18] : memref<8x128xf32, #tpu.memory_space<vmem>>, vector<8x128xf32>
    tpu.vector_store %arg4[%c0_17, %c0_18], %42 {strides = array<i32>} : memref<8x128xf32, #tpu.memory_space<vmem>>, vector<8x128xf32>,
    return
  }
  func.func @transform_0(%arg0: i32) -> (i32, i32) {
    %c0_i32 = arith.constant 0 : i32
    %c0_i32_0 = arith.constant 0 : i32
    return %arg0, %c0_i32 : i32, i32
  }
  func.func @transform_1(%arg0: i32) -> (i32, i32, i32) {
    %c0_i32 = arith.constant 0 : i32
    %c0_i32_0 = arith.constant 0 : i32
    %c0_i32_1 = arith.constant 0 : i32
    %c0_i32_2 = arith.constant 0 : i32
    return %c0_i32, %c0_i32_0, %c0_i32_1 : i32, i32, i32
  }
  func.func @transform_2(%arg0: i32) -> (i32, i32) {
    %c0_i32 = arith.constant 0 : i32
    %c0_i32_0 = arith.constant 0 : i32
    %c0_i32_1 = arith.constant 0 : i32
    return %c0_i32, %c0_i32_0 : i32, i32
  }
  func.func @transform_3(%arg0: i32) -> (i32, i32) {
    %c0_i32 = arith.constant 0 : i32
    %c0_i32_0 = arith.constant 0 : i32
    return %arg0, %c0_i32 : i32, i32
  }
}

</mosaic_0001>

<bundles_post_ra>
// kernel: tpu_custom_call.1
= control target key start
LH: loop header
LB: loop body
LE: loop exit
PB: predicated region body
PF: predicated region fallthrough
CT: control target
= control target key end

     0   :  { %8 = vsyncpa [#allocation3], 0  ;;  %s774_s0 = inlined_call_operand.hbm [shape: f32[8,128], index: 0, kind: input, shape index: {}]   ;;  %s775_s1 = inlined_call_operand.hbm [shape: bf16[3,128,128], index: 1, kind: input, shape index: {}]   ;;  %s776_s2 = inlined_call_operand.hbm [shape: f32[6,128], index: 2, kind: input, shape index: {}]   ;;  %s777_s3 = inlined_call_operand.hbm [shape: f32[8,128], index: 3, kind: output, shape index: {}]  }
   0x1   :  { %9 = vsyncpa [#allocation6], 0 }
   0x2   :  { %10 = vsyncpa [#allocation4], 0  ;;  %s663_s12 = smov [#allocation5]   ;;  %s569_s16 = scalar_lea.hbm %s775_s1, 3072 }
   0x3   :  { %s26_s13 = sshll.u32 %s663_s12, 4  ;;  %p570_p0 = scmp.ne.s32.totalorder %s775_s1, %s569_s16  ;;  %s27_s13 = int_to_ptr.vmem [resolvable:$true] %s26_s13 }
   0x4   :  { %p573_p1 = scmp.lt.u32.totalorder %s569_s16, %s775_s1 }
   0x6   :  { %p575_p2 = pnand %p573_p1, %p570_p0 }
   0x8   :  { %578 = shalt.err (!%p575_p2)
}
   0x9   :  { %s579_s21 = scalar_lea.vmem %s27_s13, 3072  ;;  %p584_p4 = scmp.lt.s32.totalorder %s27_s13, %s27_s13 }
   0xa   :  { %p580_p3 = scmp.ne.s32.totalorder %s27_s13, %s579_s21  ;;  %p585_p5 = scmp.lt.s32.totalorder %s579_s21, %s579_s21 }
   0xc   :  { %p586_p6 = por %p585_p5, %p584_p4 }
   0xe   :  { %p587_p7 = pnand %p586_p6, %p580_p3 }
  0x10   :  { %590 = shalt.err (!%p587_p7)
}
  0x11   :  { %s664_s22 = smov 64   ;;  %s665_s23 = smov 4  }
  0x12   :  { %32 = dma.hbm_to_vmem [thread:$0]  %s775_s1, 3072, %s27_s13, [#allocation6], %s664_s22, %s664_s22, %s665_s23  }
  0x13   :  { %s666_s26 = smov [#allocation2]   ;;  %s667_s28 = smov [#allocation7]  }
  0x14   :  { %s17_s27 = sshll.u32 %s666_s26, 4  ;;  %s39_s29 = sshll.u32 %s667_s28, 4  ;;  %s18_s27 = int_to_ptr.vmem [resolvable:$true] %s17_s27  ;;  %s40_s29 = int_to_ptr.vmem [resolvable:$true] %s39_s29 }
  0x15   :  { %s591_s5 = scalar_lea.hbm %s774_s0, 128 }
  0x16   :  { %p592_p8 = scmp.ne.s32.totalorder %s774_s0, %s591_s5  ;;  %p595_p9 = scmp.lt.u32.totalorder %s591_s5, %s774_s0 }
  0x18   :  { %p597_p10 = pnand %p595_p9, %p592_p8 }
  0x1a   :  { %600 = shalt.err (!%p597_p10)
}
  0x1b   :  { %s601_s1 = scalar_lea.vmem %s18_s27, 128  ;;  %p606_p12 = scmp.lt.s32.totalorder %s18_s27, %s18_s27 }
  0x1c   :  { %p602_p11 = scmp.ne.s32.totalorder %s18_s27, %s601_s1  ;;  %p607_p13 = scmp.lt.s32.totalorder %s601_s1, %s601_s1 }
  0x1e   :  { %p608_p0 = por %p607_p13, %p606_p12 }
  0x20   :  { %p609_p1 = pnand %p608_p0, %p602_p11 }
  0x22   :  { %612 = shalt.err (!%p609_p1)
}
  0x23   :  { %20 = dma.hbm_to_vmem [thread:$0]  %s774_s0, 128, %s18_s27, [#allocation3]  }
  0x24   :  { %s613_s14 = scalar_lea.hbm %s776_s2, 128 }
  0x25   :  { %p614_p2 = scmp.ne.s32.totalorder %s776_s2, %s613_s14  ;;  %p617_p3 = scmp.lt.u32.totalorder %s613_s14, %s776_s2 }
  0x27   :  { %p619_p4 = pnand %p617_p3, %p614_p2 }
  0x29   :  { %622 = shalt.err (!%p619_p4)
}
  0x2a   :  { %s623_s19 = scalar_lea.vmem %s40_s29, 128  ;;  %p628_p6 = scmp.lt.s32.totalorder %s40_s29, %s40_s29 }
  0x2b   :  { %p624_p5 = scmp.ne.s32.totalorder %s40_s29, %s623_s19  ;;  %p629_p7 = scmp.lt.s32.totalorder %s623_s19, %s623_s19 }
  0x2d   :  { %p630_p8 = por %p629_p7, %p628_p6 }
  0x2f   :  { %p631_p9 = pnand %p630_p8, %p624_p5 }
  0x31   :  { %634 = shalt.err (!%p631_p9)
}
  0x32   :  { %42 = dma.hbm_to_vmem [thread:$0]  %s776_s2, 128, %s40_s29, [#allocation6]  }
  0x33   :  { %657 = dma.done.wait [#allocation3], 128  }
  0x34   :  { %658 = vsyncadd [#allocation3], 4294967168 }
  0x35   :  { %659 = dma.done.wait [#allocation6], 3200  }
  0x36   :  { %660 = vsyncadd [#allocation6], 4294964096  ;;  %v668_v0 = vmov 0.0   ;;  %vm669_vm0 = vmmov 0   ;;  %v545_v1 = vld [vmem:[#allocation5] sm:$0xff]   ;;  %v546_v2 = vld [vmem:[#allocation5 + $0x8] sm:$0xff]   ;;  %v161_v24 = vlaneseq }
  0x37   :  { %477 = vmatprep.subr.bf16.mxu0 %v668_v0  ;;  %493 = vmatprep.mubr.msk.bf16.mxu0 %vm669_vm0, %v668_v0  ;;  %v547_v3 = vld [vmem:[#allocation5 + $0x10] sm:$0xff]   ;;  %v553_v4 = vld [vmem:[#allocation5 + $0x40] sm:$0xff]   ;;  %v548_v5 = vld [vmem:[#allocation5 + $0x18] sm:$0xff]   ;;  %s670_s2 = smov [#allocation8]  }
  0x38   :  { %497 = vmatprep.subr.bf16.mxu1 %v668_v0  ;;  %513 = vmatprep.mubr.msk.bf16.mxu1 %vm669_vm0, %v668_v0  ;;  %v554_v6 = vld [vmem:[#allocation5 + $0x48] sm:$0xff]   ;;  %v549_v7 = vld [vmem:[#allocation5 + $0x20] sm:$0xff]   ;;  %v555_v8 = vld [vmem:[#allocation5 + $0x50] sm:$0xff]   ;;  %v162_v25 = vshrl.u32 %v161_v24, 7  ;;  %s416_s21 = sshll.u32 %s670_s2, 4  ;;  %s417_s21 = int_to_ptr.vmem [resolvable:$true] %s416_s21 }
  0x39   :  { %478 = vmatpush3.bf16.msra.mxu0 %v545_v1  ;;  %498 = vmatpush3.bf16.msra.mxu1 %v553_v4  ;;  %v550_v9 = vld [vmem:[#allocation5 + $0x28] sm:$0xff]   ;;  %v556_v10 = vld [vmem:[#allocation5 + $0x58] sm:$0xff]   ;;  %v551_v11 = vld [vmem:[#allocation5 + $0x30] sm:$0xff]   ;;  %s635_s22 = scalar_lea.vmem %s417_s21, 128  ;;  %p640_p11 = scmp.lt.s32.totalorder %s417_s21, %s417_s21 }
  0x3a   :  { %479 = vmatprep.subr.bf16.mxu0 %v668_v0  ;;  %499 = vmatprep.subr.bf16.mxu1 %v668_v0  ;;  %v557_v12 = vld [vmem:[#allocation5 + $0x60] sm:$0xff]   ;;  %v552_v13 = vld [vmem:[#allocation5 + $0x38] sm:$0xff]   ;;  %v558_v16 = vld [vmem:[#allocation5 + $0x68] sm:$0xff]   ;;  %v163_v26 = vsub.s32 0, %v162_v25  ;;  %v168_v28 = vsub.s32 1, %v162_v25  ;;  %v281_v43 = vsub.s32 2, %v162_v25  ;;  %p636_p10 = scmp.ne.s32.totalorder %s417_s21, %s635_s22  ;;  %p641_p12 = scmp.lt.s32.totalorder %s635_s22, %s635_s22 }
  0x3b   :  { %v743_v14 = vld [vmem:[#allocation2] sm:$0xff]  ;;  %v559_v17 = vld [vmem:[#allocation5 + $0x70] sm:$0xff]   ;;  %v561_v19 = vld [vmem:[#allocation5 + $0x80] sm:$0xff]   ;;  %v286_v44 = vsub.s32 3, %v162_v25  ;;  %v399_v56 = vsub.s32 4, %v162_v25  ;;  %v404_v57 = vsub.s32 5, %v162_v25 }
  0x3c   :  { %v55_v15 = vpack.c.bf16 %v743_v14, %v743_v14  ;;  %v560_v18 = vld [vmem:[#allocation5 + $0x78] sm:$0xff]   ;;  %v562_v20 = vld [vmem:[#allocation5 + $0x88] sm:$0xff]   ;;  %v563_v21 = vld [vmem:[#allocation5 + $0x90] sm:$0xff]   ;;  %p642_p13 = por %p641_p12, %p640_p11 }
  0x3d   :  { %480 = vmatpush3.bf16.msra.mxu0 %v546_v2  ;;  %500 = vmatpush3.bf16.msra.mxu1 %v554_v6  ;;  %v564_v22 = vld [vmem:[#allocation5 + $0x98] sm:$0xff]   ;;  %v565_v23 = vld [vmem:[#allocation5 + $0xa0] sm:$0xff]   ;;  %v566_v40 = vld [vmem:[#allocation5 + $0xa8] sm:$0xff]  }
  0x3e   :  { %481 = vmatprep.subr.bf16.mxu0 %v668_v0  ;;  %501 = vmatprep.subr.bf16.mxu1 %v668_v0  ;;  %v53_v27 = vld [vmem:[#allocation7] sm:$0x3f]  ;;  %v567_v41 = vld [vmem:[#allocation5 + $0xb0] sm:$0xff]   ;;  %v568_v42 = vld [vmem:[#allocation5 + $0xb8] sm:$0xff]   ;;  %p643_p0 = pnand %p642_p13, %p636_p10 }
  0x3f   :  { %v164_v29 = vrot.slane %v53_v27, %v163_v26  ;;  %v169_v32 = vrot.slane %v53_v27, %v168_v28  ;;  %v282_v45 = vrot.slane %v53_v27, %v281_v43  ;;  %v287_v48 = vrot.slane %v53_v27, %v286_v44 }
  0x40   :  { %v400_v58 = vrot.slane %v53_v27, %v399_v56  ;;  %v405_v61 = vrot.slane %v53_v27, %v404_v57 }
  0x41   :  { %482 = vmatpush3.bf16.msra.mxu0 %v547_v3  ;;  %502 = vmatpush3.bf16.msra.mxu1 %v555_v8 }
  0x42   :  { %483 = vmatprep.subr.bf16.mxu0 %v668_v0  ;;  %503 = vmatprep.subr.bf16.mxu1 %v668_v0 }
  0x45   :  { %484 = vmatpush3.bf16.msra.mxu0 %v548_v5  ;;  %504 = vmatpush3.bf16.msra.mxu1 %v556_v10 }
  0x46   :  { %485 = vmatprep.subr.bf16.mxu0 %v668_v0  ;;  %505 = vmatprep.subr.bf16.mxu1 %v668_v0 }
  0x49   :  { %486 = vmatpush3.bf16.msra.mxu0 %v549_v7  ;;  %506 = vmatpush3.bf16.msra.mxu1 %v557_v12 }
  0x4a   :  { %487 = vmatprep.subr.bf16.mxu0 %v668_v0  ;;  %507 = vmatprep.subr.bf16.mxu1 %v668_v0 }
  0x4d   :  { %488 = vmatpush3.bf16.msra.mxu0 %v550_v9  ;;  %508 = vmatpush3.bf16.msra.mxu1 %v558_v16 }
  0x4e   :  { %489 = vmatprep.subr.bf16.mxu0 %v668_v0  ;;  %509 = vmatprep.subr.bf16.mxu1 %v668_v0 }
  0x51   :  { %490 = vmatpush3.bf16.msra.mxu0 %v551_v11  ;;  %510 = vmatpush3.bf16.msra.mxu1 %v559_v17 }
  0x52   :  { %491 = vmatprep.subr.bf16.mxu0 %v668_v0  ;;  %511 = vmatprep.subr.bf16.mxu1 %v668_v0 }
  0x55   :  { %492 = vmatpush3.bf16.msra.mxu0 %v552_v13  ;;  %512 = vmatpush3.bf16.msra.mxu1 %v560_v18 }
  0x56   :  { %517 = vmatprep.subr.bf16.mxu0 %v668_v0 }
  0x58   :  { %494 = vmatmul.mubr.bf16.vlgmr.msra.gmra.mrb[0].mxu0 %v55_v15 }
  0x59   :  { %533 = vmatprep.mubr.msk.bf16.mxu0 %vm669_vm0, %v668_v0  ;;  %518 = vmatpush3.bf16.msra.mxu0 %v561_v19 }
  0x5a   :  { %519 = vmatprep.subr.bf16.mxu0 %v668_v0 }
  0x5d   :  { %520 = vmatpush3.bf16.msra.mxu0 %v562_v20 }
  0x5e   :  { %521 = vmatprep.subr.bf16.mxu0 %v668_v0 }
  0x61   :  { %522 = vmatpush3.bf16.msra.mxu0 %v563_v21 }
  0x62   :  { %523 = vmatprep.subr.bf16.mxu0 %v668_v0 }
  0x65   :  { %524 = vmatpush3.bf16.msra.mxu0 %v564_v22 }
  0x66   :  { %525 = vmatprep.subr.bf16.mxu0 %v668_v0 }
  0x69   :  { %526 = vmatpush3.bf16.msra.mxu0 %v565_v23 }
  0x6a   :  { %527 = vmatprep.subr.bf16.mxu0 %v668_v0 }
  0x6d   :  { %528 = vmatpush3.bf16.msra.mxu0 %v566_v40 }
  0x6e   :  { %529 = vmatprep.subr.bf16.mxu0 %v668_v0 }
  0x71   :  { %530 = vmatpush3.bf16.msra.mxu0 %v567_v41 }
  0x72   :  { %531 = vmatprep.subr.bf16.mxu0 %v668_v0 }
  0x75   :  { %532 = vmatpush3.bf16.msra.mxu0 %v568_v42 }
 0x12b   :  { %v154_v30 = vpop.f32.mrb[0].mxu0 }
 0x12c   :  { %v160_v31 = vsub.f32 %v154_v30, %v154_v30  ;;  %v495_v33 = vpop.f32.mrb[1].mxu0 }
 0x12d   :  { %v157_v34 = vpop.f32.mrb[2].mxu0 }
 0x12e   :  { %v165_v35 = vmul.f32 %v164_v29, %v160_v31  ;;  %v496_v36 = vpop.f32.mrb[3].mxu0 }
 0x130   :  { %v170_v37 = vadd.f32 %v169_v32, %v165_v35 }
 0x132   :  { %v171_v38 = vmax.f32 %v170_v37, 0.0 }
 0x134   :  { %v172_v39 = vpack.c.bf16 %v171_v38, %v171_v38 }
 0x136   :  { %514 = vmatmul.mubr.bf16.vlgmr.msra.gmra.mrb[0].mxu1 %v172_v39 }
 0x209   :  { %v272_v46 = vpop.f32.mrb[0].mxu1 }
 0x20a   :  { %v278_v47 = vsub.f32 %v272_v46, %v272_v46  ;;  %v515_v49 = vpop.f32.mrb[1].mxu1 }
 0x20b   :  { %v275_v50 = vpop.f32.mrb[2].mxu1 }
 0x20c   :  { %v283_v51 = vmul.f32 %v282_v45, %v278_v47  ;;  %v516_v52 = vpop.f32.mrb[3].mxu1 }
 0x20e   :  { %v288_v53 = vadd.f32 %v287_v48, %v283_v51 }
 0x210   :  { %v289_v54 = vmax.f32 %v288_v53, 0.0 }
 0x212   :  { %v290_v55 = vpack.c.bf16 %v289_v54, %v289_v54 }
 0x214   :  { %534 = vmatmul.mubr.bf16.vlgmr.msra.gmra.mrb[4].mxu0 %v290_v55 }
 0x2e7   :  { %v390_v59 = vpop.f32.mrb[4].mxu0 }
 0x2e8   :  { %v396_v60 = vsub.f32 %v390_v59, %v390_v59  ;;  %v535_v62 = vpop.f32.mrb[5].mxu0 }
 0x2e9   :  { %v393_v63 = vpop.f32.mrb[6].mxu0 }
 0x2ea   :  { %v401_v0 = vmul.f32 %v400_v58, %v396_v60  ;;  %v536_v1 = vpop.f32.mrb[7].mxu0 }
 0x2ec   :  { %v406_v2 = vadd.f32 %v405_v61, %v401_v0 }
 0x2ee   :  { %v407_v3 = vadd.f32 %v406_v2, %v743_v14 }
 0x2f0   :  { %v408_v4 = vmax.f32 %v407_v3, 0.0 }
 0x2f2   :  { %409 = vst [vmem:[#allocation8] sm:$0xff] %v408_v4 }
 0x2f3   :  { %646 = shalt.err (!%p643_p0)
}
 0x2f4   :  { %s647_s25 = scalar_lea.hbm %s777_s3, 128 }
 0x2f5   :  { %p648_p1 = scmp.ne.s32.totalorder %s777_s3, %s647_s25  ;;  %p651_p2 = scmp.lt.u32.totalorder %s647_s25, %s777_s3 }
 0x2f7   :  { %p653_p3 = pnand %p651_p2, %p648_p1 }
 0x2f9   :  { %656 = shalt.err (!%p653_p3)
}
 0x2fa   :  { %419 = dma.vmem_to_hbm [thread:$0]  %s417_s21, 128, %s777_s3, [#allocation4]  }
 0x2fb   :  { %661 = dma.done.wait [#allocation4], 128  }
 0x2fc   :  { %662 = vsyncadd [#allocation4], 4294967168 }
 0x2fd   :  { %423 = vsyncpa [#allocation3], 1 }
 0x2fe   :  { %424 = vsyncpa [#allocation6], 1 }
 0x2ff   :  { %425 = vsyncpa [#allocation4], 1 }

</bundles_post_ra>
